<compile_context>
chip_gen: v6e
topology: v6e:2x2x1
jax: 0.10.0
libtpu: 0.0.40
codegen_flags: <defaults>
</compile_context>

<pallas_src>
import jax
import jax.numpy as jnp
from jax import lax
from jax.experimental import pallas as pl
from jax.experimental.pallas import tpu as pltpu


def _model_kernel(x_ref, w_ref, out_ref, xp_ref):
    """Fused pad + ConvTranspose2d(1,1,3) + sigmoid + matrix inverse + flatten.

    x_ref  : (1, H, W) f32 VMEM   single-channel spatial plane, H == W
    w_ref  : (9,)      f32 SMEM   flattened 3x3 ConvTranspose2d weight
    out_ref: (1, N*N)  f32 VMEM   flattened inverse(sigmoid(conv_transpose(x))), N = H+2
    xp_ref : (N, 2N)   f32 VMEM   scratch: zero-padded input plane
    """
    H = x_ref.shape[1]
    W = x_ref.shape[2]
    N = H + 2                     # conv_transpose output size (k=3, s=1, p=0)
    M = 2 * N                     # augmented matrix width [ I | A ]

    # ---- hoist the 9 SMEM weight scalars away from the vector chain
    w = [w_ref[i] for i in range(9)]

    # ---- zero-padded plane: x in rows [0,H), lanes [0,W) of an (N, M) buffer
    xp_ref[...] = jnp.zeros((N, M), jnp.float32)
    xp_ref[0:H, 0:W] = x_ref[0]
    xp = xp_ref[...]

    # ------------------------------------------------------------------ conv
    # ConvTranspose (stride 1, pad 0):  O[i, j] = sum_{sr,sc} w[sr,sc] * x[i-sr, j-sc]
    # Lane roll by N+sc puts x column c at lane N+c+sc (left half stays zero because
    # lanes >= W of xp are zero and M-(N+sc) >= W).  Sublane roll by sr puts row a at
    # row a+sr (rows >= H of xp are zero).  3 lane rolls + 2 sublane rolls + 9 MACs.
    lane = [pltpu.roll(xp, N + sc, axis=1) for sc in range(3)]

    conv = jnp.zeros((N, M), jnp.float32)
    for sr in range(3):
        contrib = (w[3 * sr + 0] * lane[0]
                   + w[3 * sr + 1] * lane[1]
                   + w[3 * sr + 2] * lane[2])
        if sr > 0:
            contrib = pltpu.roll(contrib, sr, axis=0)
        conv = conv + contrib

    # --------------------------------------------------------------- sigmoid
    # numerically-stable:  sigmoid(z) = 1/(1+e) if z>=0 else e/(1+e),  e = exp(-|z|)
    e = jnp.exp(-jnp.abs(conv))
    t = 1.0 / (1.0 + e)
    sig = jnp.where(conv >= 0.0, t, e * t)

    # --------------------------------------------- augmented matrix [ I | A ]
    rr = lax.broadcasted_iota(jnp.int32, (N, M), 0)
    cc = lax.broadcasted_iota(jnp.int32, (N, M), 1)
    ident = jnp.where(rr == cc, 1.0, 0.0)
    aug = jnp.where(cc >= N, sig, ident)

    # ------------------------------------------ Gauss-Jordan (fully unrolled)
    # Reduce the right block (A) to I; the left block then holds A^{-1}.
    # Per step: 2 static slices, approx reciprocal + 1 Newton step, rank-1 update.
    r_col = lax.broadcasted_iota(jnp.int32, (N, 1), 0)
    for k in range(N):
        col = aug[:, N + k:N + k + 1]              # (N, 1) pivot column
        piv = col[k:k + 1, :]                      # (1, 1) pivot
        inv0 = pl.reciprocal(piv, approx=True)     # EUP vrcp
        inv_p = inv0 * (2.0 - piv * inv0)          # Newton-Raphson -> ~f32 accurate
        prow = aug[k:k + 1, :]                     # (1, M) unscaled pivot row
        # g_i = col_i/piv for i != k ; g_k = (piv-1)/piv  =>  one fused rank-1 update
        g = jnp.where(r_col == k, piv - 1.0, col) * inv_p
        aug = aug - g * prow

    # ---------------------------- flattened output: row k -> lanes [k*N, (k+1)*N)
    for k in range(N):
        out_ref[:, k * N:(k + 1) * N] = aug[k:k + 1, 0:N]


@jax.jit
def model_forward(x0, weight):
    """x0: (1, H, W) float32 (unbatched CHW, C=1, H == W).
       weight: (3, 3) float32 ConvTranspose2d weight (in=1, out=1 squeezed).
       Returns the flattened inverse, shape (1, (H+2)**2)."""
    # The double permute([0,2,1]) of the original forward is an exact identity -> dropped.
    B, H, W = x0.shape
    assert B == 1 and H == W, "matrix inverse requires a square conv output"
    N = H + 2

    return pl.pallas_call(
        _model_kernel,
        out_shape=jax.ShapeDtypeStruct((1, N * N), jnp.float32),
        in_specs=[
            pl.BlockSpec(memory_space=pltpu.MemorySpace.VMEM),   # (1, H, W) input plane
            pl.BlockSpec(memory_space=pltpu.MemorySpace.SMEM),   # (9,) weight scalars
        ],
        out_specs=pl.BlockSpec(memory_space=pltpu.MemorySpace.VMEM),
        scratch_shapes=[pltpu.VMEM((N, 2 * N), jnp.float32)],    # zero-padded plane
    )(x0.astype(jnp.float32), weight.reshape(9).astype(jnp.float32))


if __name__ == "__main__":
    key = jax.random.PRNGKey(0)
    kx, kw = jax.random.split(key)

    # small shapes: (1, 6, 6) input -> (8, 8) conv-transpose output -> inverse -> (1, 64)
    H = 6
    x0 = jax.random.normal(kx, (1, H, H), dtype=jnp.float32)
    # deterministic ConvTranspose2d-style init, U(-sqrt(1/9), sqrt(1/9))
    w = jax.random.uniform(kw, (3, 3), dtype=jnp.float32,
                           minval=-1.0 / 3.0, maxval=1.0 / 3.0)

    out = model_forward(x0, w)
    jax.block_until_ready(out)

    # pure-JAX reference: full-conv (== ConvTranspose2d k=3,s=1,p=0) -> sigmoid -> inverse
    N = H + 2
    xpad = jnp.pad(x0[0], ((2, 2), (2, 2)))
    conv_ref = jnp.zeros((N, N), jnp.float32)
    for sr in range(3):
        for sc in range(3):
            conv_ref = conv_ref + w[sr, sc] * xpad[2 - sr:2 - sr + N, 2 - sc:2 - sc + N]
    ref = jnp.linalg.inv(jax.nn.sigmoid(conv_ref)).reshape(1, N * N)

    rel_err = float(jnp.max(jnp.abs(out - ref)) / (jnp.max(jnp.abs(ref)) + 1e-6))
    assert rel_err < 5e-2, f"mismatch vs reference: rel_err={rel_err}"
    print("KERNEL_OK")
</pallas_src>

<mosaic_0001>
module attributes {stable_mosaic.version = 11 : i64} {
  func.func @_model_kernel(%arg0: memref<1x6x6xf32, #tpu.memory_space<vmem>>, %arg1: memref<9xf32, #tpu.memory_space<smem>>, %arg2: memref<1x64xf32, #tpu.memory_space<vmem>>, %arg3: memref<8x16xf32, #tpu.memory_space<vmem>>) attributes {dimension_semantics = [], scalar_prefetch = 0 : i64, scratch_operands = 1 : i64, tpu.core_type = #tpu.core_type<tc>} {
    %c0 = arith.constant 0 : index
    %0 = memref.load %arg1[%c0] : memref<9xf32, #tpu.memory_space<smem>>
    %c1 = arith.constant 1 : index
    %1 = memref.load %arg1[%c1] : memref<9xf32, #tpu.memory_space<smem>>
    %c2 = arith.constant 2 : index
    %2 = memref.load %arg1[%c2] : memref<9xf32, #tpu.memory_space<smem>>
    %c3 = arith.constant 3 : index
    %3 = memref.load %arg1[%c3] : memref<9xf32, #tpu.memory_space<smem>>
    %c4 = arith.constant 4 : index
    %4 = memref.load %arg1[%c4] : memref<9xf32, #tpu.memory_space<smem>>
    %c5 = arith.constant 5 : index
    %5 = memref.load %arg1[%c5] : memref<9xf32, #tpu.memory_space<smem>>
    %c6 = arith.constant 6 : index
    %6 = memref.load %arg1[%c6] : memref<9xf32, #tpu.memory_space<smem>>
    %c7 = arith.constant 7 : index
    %7 = memref.load %arg1[%c7] : memref<9xf32, #tpu.memory_space<smem>>
    %c8 = arith.constant 8 : index
    %8 = memref.load %arg1[%c8] : memref<9xf32, #tpu.memory_space<smem>>
    %cst = arith.constant 0.000000e+00 : f32
    %9 = vector.broadcast %cst : f32 to vector<8x16xf32>
    %c0_0 = arith.constant 0 : index
    %c0_1 = arith.constant 0 : index
    %10 = vector.load %arg3[%c0_0, %c0_1] : memref<8x16xf32, #tpu.memory_space<vmem>>, vector<8x16xf32>
    tpu.vector_store %arg3[%c0_0, %c0_1], %9 {strides = array<i32>} : memref<8x16xf32, #tpu.memory_space<vmem>>, vector<8x16xf32>,
    %c0_2 = arith.constant 0 : index
    %c0_3 = arith.constant 0 : index
    %c0_4 = arith.constant 0 : index
    %11 = vector.load %arg0[%c0_2, %c0_3, %c0_4] : memref<1x6x6xf32, #tpu.memory_space<vmem>>, vector<1x6x6xf32>
    %12 = vector.shape_cast %11 : vector<1x6x6xf32> to vector<6x6xf32>
    %c0_5 = arith.constant 0 : index
    %c0_6 = arith.constant 0 : index
    %13 = vector.load %arg3[%c0_5, %c0_6] : memref<8x16xf32, #tpu.memory_space<vmem>>, vector<6x6xf32>
    tpu.vector_store %arg3[%c0_5, %c0_6], %12 {strides = array<i32>} : memref<8x16xf32, #tpu.memory_space<vmem>>, vector<6x6xf32>,
    %c0_7 = arith.constant 0 : index
    %c0_8 = arith.constant 0 : index
    %14 = vector.load %arg3[%c0_7, %c0_8] : memref<8x16xf32, #tpu.memory_space<vmem>>, vector<8x16xf32>
    %c8_i32 = arith.constant 8 : i32
    %15 = tpu.dynamic_rotate %14 by %c8_i32 dim 1 : vector<8x16xf32>, i32 -> vector<8x16xf32>
    %c9_i32 = arith.constant 9 : i32
    %16 = tpu.dynamic_rotate %14 by %c9_i32 dim 1 : vector<8x16xf32>, i32 -> vector<8x16xf32>
    %c10_i32 = arith.constant 10 : i32
    %17 = tpu.dynamic_rotate %14 by %c10_i32 dim 1 : vector<8x16xf32>, i32 -> vector<8x16xf32>
    %cst_9 = arith.constant 0.000000e+00 : f32
    %18 = vector.broadcast %cst_9 : f32 to vector<8x16xf32>
    %19 = vector.broadcast %0 : f32 to vector<8x16xf32>
    %20 = arith.mulf %19, %15 : vector<8x16xf32>
    %21 = vector.broadcast %1 : f32 to vector<8x16xf32>
    %22 = arith.mulf %21, %16 : vector<8x16xf32>
    %23 = arith.addf %20, %22 : vector<8x16xf32>
    %24 = vector.broadcast %2 : f32 to vector<8x16xf32>
    %25 = arith.mulf %24, %17 : vector<8x16xf32>
    %26 = arith.addf %23, %25 : vector<8x16xf32>
    %27 = arith.addf %18, %26 : vector<8x16xf32>
    %28 = vector.broadcast %3 : f32 to vector<8x16xf32>
    %29 = arith.mulf %28, %15 : vector<8x16xf32>
    %30 = vector.broadcast %4 : f32 to vector<8x16xf32>
    %31 = arith.mulf %30, %16 : vector<8x16xf32>
    %32 = arith.addf %29, %31 : vector<8x16xf32>
    %33 = vector.broadcast %5 : f32 to vector<8x16xf32>
    %34 = arith.mulf %33, %17 : vector<8x16xf32>
    %35 = arith.addf %32, %34 : vector<8x16xf32>
    %c1_i32 = arith.constant 1 : i32
    %36 = tpu.dynamic_rotate %35 by %c1_i32 dim 0 : vector<8x16xf32>, i32 -> vector<8x16xf32>
    %37 = arith.addf %27, %36 : vector<8x16xf32>
    %38 = vector.broadcast %6 : f32 to vector<8x16xf32>
    %39 = arith.mulf %38, %15 : vector<8x16xf32>
    %40 = vector.broadcast %7 : f32 to vector<8x16xf32>
    %41 = arith.mulf %40, %16 : vector<8x16xf32>
    %42 = arith.addf %39, %41 : vector<8x16xf32>
    %43 = vector.broadcast %8 : f32 to vector<8x16xf32>
    %44 = arith.mulf %43, %17 : vector<8x16xf32>
    %45 = arith.addf %42, %44 : vector<8x16xf32>
    %c2_i32 = arith.constant 2 : i32
    %46 = tpu.dynamic_rotate %45 by %c2_i32 dim 0 : vector<8x16xf32>, i32 -> vector<8x16xf32>
    %47 = arith.addf %37, %46 : vector<8x16xf32>
    %48 = math.absf %47 : vector<8x16xf32>
    %cst_10 = arith.constant 0.000000e+00 : f32
    %49 = vector.broadcast %cst_10 : f32 to vector<8x16xf32>
    %50 = arith.subf %49, %48 : vector<8x16xf32>
    %51 = math.exp %50 : vector<8x16xf32>
    %cst_11 = arith.constant 1.000000e+00 : f32
    %52 = vector.broadcast %cst_11 : f32 to vector<8x16xf32>
    %53 = arith.addf %52, %51 : vector<8x16xf32>
    %cst_12 = arith.constant 1.000000e+00 : f32
    %54 = vector.broadcast %cst_12 : f32 to vector<8x16xf32>
    %55 = arith.divf %54, %53 : vector<8x16xf32>
    %cst_13 = arith.constant 0.000000e+00 : f32
    %56 = vector.broadcast %cst_13 : f32 to vector<8x16xf32>
    %57 = arith.cmpf oge, %47, %56 : vector<8x16xf32>
    %58 = arith.mulf %51, %55 : vector<8x16xf32>
    %59 = arith.select %57, %55, %58 : vector<8x16xi1>, vector<8x16xf32>
    %60 = tpu.iota {dimensions = array<i32: 0>} : vector<8x16xi32>
    %61 = tpu.iota {dimensions = array<i32: 1>} : vector<8x16xi32>
    %62 = arith.cmpi eq, %60, %61 : vector<8x16xi32>
    %cst_14 = arith.constant 1.000000e+00 : f32
    %cst_15 = arith.constant 0.000000e+00 : f32
    %63 = vector.broadcast %cst_14 : f32 to vector<8x16xf32>
    %64 = vector.broadcast %cst_15 : f32 to vector<8x16xf32>
    %65 = arith.select %62, %63, %64 : vector<8x16xi1>, vector<8x16xf32>
    %c8_i32_16 = arith.constant 8 : i32
    %66 = vector.broadcast %c8_i32_16 : i32 to vector<8x16xi32>
    %67 = arith.cmpi sge, %61, %66 : vector<8x16xi32>
    %68 = arith.select %67, %59, %65 : vector<8x16xi1>, vector<8x16xf32>
    %69 = tpu.iota {dimensions = array<i32: 0>} : vector<8x1xi32>
    %70 = vector.extract_strided_slice %68 {offsets = [0, 8], sizes = [8, 1], strides = [1, 1]} : vector<8x16xf32> to vector<8x1xf32>
    %71 = vector.extract_strided_slice %70 {offsets = [0, 0], sizes = [1, 1], strides = [1, 1]} : vector<8x1xf32> to vector<1x1xf32>
    %72 = tpu.reciprocal %71 {approx = true} : vector<1x1xf32> -> vector<1x1xf32>
    %73 = arith.mulf %71, %72 : vector<1x1xf32>
    %cst_17 = arith.constant 2.000000e+00 : f32
    %74 = vector.broadcast %cst_17 : f32 to vector<1x1xf32>
    %75 = arith.subf %74, %73 : vector<1x1xf32>
    %76 = arith.mulf %72, %75 : vector<1x1xf32>
    %77 = vector.extract_strided_slice %68 {offsets = [0, 0], sizes = [1, 16], strides = [1, 1]} : vector<8x16xf32> to vector<1x16xf32>
    %c0_i32 = arith.constant 0 : i32
    %78 = vector.broadcast %c0_i32 : i32 to vector<8x1xi32>
    %79 = arith.cmpi eq, %69, %78 : vector<8x1xi32>
    %cst_18 = arith.constant 1.000000e+00 : f32
    %80 = vector.broadcast %cst_18 : f32 to vector<1x1xf32>
    %81 = arith.subf %71, %80 : vector<1x1xf32>
    %82 = vector.shape_cast %81 : vector<1x1xf32> to vector<1x1xf32>
    %83 = vector.broadcast %82 : vector<1x1xf32> to vector<8x1xf32>
    %84 = arith.select %79, %83, %70 : vector<8x1xi1>, vector<8x1xf32>
    %85 = vector.broadcast %76 : vector<1x1xf32> to vector<8x1xf32>
    %86 = arith.mulf %84, %85 : vector<8x1xf32>
    %87 = vector.broadcast %86 : vector<8x1xf32> to vector<8x16xf32>
    %88 = vector.broadcast %77 : vector<1x16xf32> to vector<8x16xf32>
    %89 = arith.mulf %87, %88 : vector<8x16xf32>
    %90 = arith.subf %68, %89 : vector<8x16xf32>
    %91 = vector.extract_strided_slice %90 {offsets = [0, 9], sizes = [8, 1], strides = [1, 1]} : vector<8x16xf32> to vector<8x1xf32>
    %92 = vector.extract_strided_slice %91 {offsets = [1, 0], sizes = [1, 1], strides = [1, 1]} : vector<8x1xf32> to vector<1x1xf32>
    %93 = tpu.reciprocal %92 {approx = true} : vector<1x1xf32> -> vector<1x1xf32>
    %94 = arith.mulf %92, %93 : vector<1x1xf32>
    %cst_19 = arith.constant 2.000000e+00 : f32
    %95 = vector.broadcast %cst_19 : f32 to vector<1x1xf32>
    %96 = arith.subf %95, %94 : vector<1x1xf32>
    %97 = arith.mulf %93, %96 : vector<1x1xf32>
    %98 = vector.extract_strided_slice %90 {offsets = [1, 0], sizes = [1, 16], strides = [1, 1]} : vector<8x16xf32> to vector<1x16xf32>
    %c1_i32_20 = arith.constant 1 : i32
    %99 = vector.broadcast %c1_i32_20 : i32 to vector<8x1xi32>
    %100 = arith.cmpi eq, %69, %99 : vector<8x1xi32>
    %cst_21 = arith.constant 1.000000e+00 : f32
    %101 = vector.broadcast %cst_21 : f32 to vector<1x1xf32>
    %102 = arith.subf %92, %101 : vector<1x1xf32>
    %103 = vector.shape_cast %102 : vector<1x1xf32> to vector<1x1xf32>
    %104 = vector.broadcast %103 : vector<1x1xf32> to vector<8x1xf32>
    %105 = arith.select %100, %104, %91 : vector<8x1xi1>, vector<8x1xf32>
    %106 = vector.broadcast %97 : vector<1x1xf32> to vector<8x1xf32>
    %107 = arith.mulf %105, %106 : vector<8x1xf32>
    %108 = vector.broadcast %107 : vector<8x1xf32> to vector<8x16xf32>
    %109 = vector.broadcast %98 : vector<1x16xf32> to vector<8x16xf32>
    %110 = arith.mulf %108, %109 : vector<8x16xf32>
    %111 = arith.subf %90, %110 : vector<8x16xf32>
    %112 = vector.extract_strided_slice %111 {offsets = [0, 10], sizes = [8, 1], strides = [1, 1]} : vector<8x16xf32> to vector<8x1xf32>
    %113 = vector.extract_strided_slice %112 {offsets = [2, 0], sizes = [1, 1], strides = [1, 1]} : vector<8x1xf32> to vector<1x1xf32>
    %114 = tpu.reciprocal %113 {approx = true} : vector<1x1xf32> -> vector<1x1xf32>
    %115 = arith.mulf %113, %114 : vector<1x1xf32>
    %cst_22 = arith.constant 2.000000e+00 : f32
    %116 = vector.broadcast %cst_22 : f32 to vector<1x1xf32>
    %117 = arith.subf %116, %115 : vector<1x1xf32>
    %118 = arith.mulf %114, %117 : vector<1x1xf32>
    %119 = vector.extract_strided_slice %111 {offsets = [2, 0], sizes = [1, 16], strides = [1, 1]} : vector<8x16xf32> to vector<1x16xf32>
    %c2_i32_23 = arith.constant 2 : i32
    %120 = vector.broadcast %c2_i32_23 : i32 to vector<8x1xi32>
    %121 = arith.cmpi eq, %69, %120 : vector<8x1xi32>
    %cst_24 = arith.constant 1.000000e+00 : f32
    %122 = vector.broadcast %cst_24 : f32 to vector<1x1xf32>
    %123 = arith.subf %113, %122 : vector<1x1xf32>
    %124 = vector.shape_cast %123 : vector<1x1xf32> to vector<1x1xf32>
    %125 = vector.broadcast %124 : vector<1x1xf32> to vector<8x1xf32>
    %126 = arith.select %121, %125, %112 : vector<8x1xi1>, vector<8x1xf32>
    %127 = vector.broadcast %118 : vector<1x1xf32> to vector<8x1xf32>
    %128 = arith.mulf %126, %127 : vector<8x1xf32>
    %129 = vector.broadcast %128 : vector<8x1xf32> to vector<8x16xf32>
    %130 = vector.broadcast %119 : vector<1x16xf32> to vector<8x16xf32>
    %131 = arith.mulf %129, %130 : vector<8x16xf32>
    %132 = arith.subf %111, %131 : vector<8x16xf32>
    %133 = vector.extract_strided_slice %132 {offsets = [0, 11], sizes = [8, 1], strides = [1, 1]} : vector<8x16xf32> to vector<8x1xf32>
    %134 = vector.extract_strided_slice %133 {offsets = [3, 0], sizes = [1, 1], strides = [1, 1]} : vector<8x1xf32> to vector<1x1xf32>
    %135 = tpu.reciprocal %134 {approx = true} : vector<1x1xf32> -> vector<1x1xf32>
    %136 = arith.mulf %134, %135 : vector<1x1xf32>
    %cst_25 = arith.constant 2.000000e+00 : f32
    %137 = vector.broadcast %cst_25 : f32 to vector<1x1xf32>
    %138 = arith.subf %137, %136 : vector<1x1xf32>
    %139 = arith.mulf %135, %138 : vector<1x1xf32>
    %140 = vector.extract_strided_slice %132 {offsets = [3, 0], sizes = [1, 16], strides = [1, 1]} : vector<8x16xf32> to vector<1x16xf32>
    %c3_i32 = arith.constant 3 : i32
    %141 = vector.broadcast %c3_i32 : i32 to vector<8x1xi32>
    %142 = arith.cmpi eq, %69, %141 : vector<8x1xi32>
    %cst_26 = arith.constant 1.000000e+00 : f32
    %143 = vector.broadcast %cst_26 : f32 to vector<1x1xf32>
    %144 = arith.subf %134, %143 : vector<1x1xf32>
    %145 = vector.shape_cast %144 : vector<1x1xf32> to vector<1x1xf32>
    %146 = vector.broadcast %145 : vector<1x1xf32> to vector<8x1xf32>
    %147 = arith.select %142, %146, %133 : vector<8x1xi1>, vector<8x1xf32>
    %148 = vector.broadcast %139 : vector<1x1xf32> to vector<8x1xf32>
    %149 = arith.mulf %147, %148 : vector<8x1xf32>
    %150 = vector.broadcast %149 : vector<8x1xf32> to vector<8x16xf32>
    %151 = vector.broadcast %140 : vector<1x16xf32> to vector<8x16xf32>
    %152 = arith.mulf %150, %151 : vector<8x16xf32>
    %153 = arith.subf %132, %152 : vector<8x16xf32>
    %154 = vector.extract_strided_slice %153 {offsets = [0, 12], sizes = [8, 1], strides = [1, 1]} : vector<8x16xf32> to vector<8x1xf32>
    %155 = vector.extract_strided_slice %154 {offsets = [4, 0], sizes = [1, 1], strides = [1, 1]} : vector<8x1xf32> to vector<1x1xf32>
    %156 = tpu.reciprocal %155 {approx = true} : vector<1x1xf32> -> vector<1x1xf32>
    %157 = arith.mulf %155, %156 : vector<1x1xf32>
    %cst_27 = arith.constant 2.000000e+00 : f32
    %158 = vector.broadcast %cst_27 : f32 to vector<1x1xf32>
    %159 = arith.subf %158, %157 : vector<1x1xf32>
    %160 = arith.mulf %156, %159 : vector<1x1xf32>
    %161 = vector.extract_strided_slice %153 {offsets = [4, 0], sizes = [1, 16], strides = [1, 1]} : vector<8x16xf32> to vector<1x16xf32>
    %c4_i32 = arith.constant 4 : i32
    %162 = vector.broadcast %c4_i32 : i32 to vector<8x1xi32>
    %163 = arith.cmpi eq, %69, %162 : vector<8x1xi32>
    %cst_28 = arith.constant 1.000000e+00 : f32
    %164 = vector.broadcast %cst_28 : f32 to vector<1x1xf32>
    %165 = arith.subf %155, %164 : vector<1x1xf32>
    %166 = vector.shape_cast %165 : vector<1x1xf32> to vector<1x1xf32>
    %167 = vector.broadcast %166 : vector<1x1xf32> to vector<8x1xf32>
    %168 = arith.select %163, %167, %154 : vector<8x1xi1>, vector<8x1xf32>
    %169 = vector.broadcast %160 : vector<1x1xf32> to vector<8x1xf32>
    %170 = arith.mulf %168, %169 : vector<8x1xf32>
    %171 = vector.broadcast %170 : vector<8x1xf32> to vector<8x16xf32>
    %172 = vector.broadcast %161 : vector<1x16xf32> to vector<8x16xf32>
    %173 = arith.mulf %171, %172 : vector<8x16xf32>
    %174 = arith.subf %153, %173 : vector<8x16xf32>
    %175 = vector.extract_strided_slice %174 {offsets = [0, 13], sizes = [8, 1], strides = [1, 1]} : vector<8x16xf32> to vector<8x1xf32>
    %176 = vector.extract_strided_slice %175 {offsets = [5, 0], sizes = [1, 1], strides = [1, 1]} : vector<8x1xf32> to vector<1x1xf32>
    %177 = tpu.reciprocal %176 {approx = true} : vector<1x1xf32> -> vector<1x1xf32>
    %178 = arith.mulf %176, %177 : vector<1x1xf32>
    %cst_29 = arith.constant 2.000000e+00 : f32
    %179 = vector.broadcast %cst_29 : f32 to vector<1x1xf32>
    %180 = arith.subf %179, %178 : vector<1x1xf32>
    %181 = arith.mulf %177, %180 : vector<1x1xf32>
    %182 = vector.extract_strided_slice %174 {offsets = [5, 0], sizes = [1, 16], strides = [1, 1]} : vector<8x16xf32> to vector<1x16xf32>
    %c5_i32 = arith.constant 5 : i32
    %183 = vector.broadcast %c5_i32 : i32 to vector<8x1xi32>
    %184 = arith.cmpi eq, %69, %183 : vector<8x1xi32>
    %cst_30 = arith.constant 1.000000e+00 : f32
    %185 = vector.broadcast %cst_30 : f32 to vector<1x1xf32>
    %186 = arith.subf %176, %185 : vector<1x1xf32>
    %187 = vector.shape_cast %186 : vector<1x1xf32> to vector<1x1xf32>
    %188 = vector.broadcast %187 : vector<1x1xf32> to vector<8x1xf32>
    %189 = arith.select %184, %188, %175 : vector<8x1xi1>, vector<8x1xf32>
    %190 = vector.broadcast %181 : vector<1x1xf32> to vector<8x1xf32>
    %191 = arith.mulf %189, %190 : vector<8x1xf32>
    %192 = vector.broadcast %191 : vector<8x1xf32> to vector<8x16xf32>
    %193 = vector.broadcast %182 : vector<1x16xf32> to vector<8x16xf32>
    %194 = arith.mulf %192, %193 : vector<8x16xf32>
    %195 = arith.subf %174, %194 : vector<8x16xf32>
    %196 = vector.extract_strided_slice %195 {offsets = [0, 14], sizes = [8, 1], strides = [1, 1]} : vector<8x16xf32> to vector<8x1xf32>
    %197 = vector.extract_strided_slice %196 {offsets = [6, 0], sizes = [1, 1], strides = [1, 1]} : vector<8x1xf32> to vector<1x1xf32>
    %198 = tpu.reciprocal %197 {approx = true} : vector<1x1xf32> -> vector<1x1xf32>
    %199 = arith.mulf %197, %198 : vector<1x1xf32>
    %cst_31 = arith.constant 2.000000e+00 : f32
    %200 = vector.broadcast %cst_31 : f32 to vector<1x1xf32>
    %201 = arith.subf %200, %199 : vector<1x1xf32>
    %202 = arith.mulf %198, %201 : vector<1x1xf32>
    %203 = vector.extract_strided_slice %195 {offsets = [6, 0], sizes = [1, 16], strides = [1, 1]} : vector<8x16xf32> to vector<1x16xf32>
    %c6_i32 = arith.constant 6 : i32
    %204 = vector.broadcast %c6_i32 : i32 to vector<8x1xi32>
    %205 = arith.cmpi eq, %69, %204 : vector<8x1xi32>
    %cst_32 = arith.constant 1.000000e+00 : f32
    %206 = vector.broadcast %cst_32 : f32 to vector<1x1xf32>
    %207 = arith.subf %197, %206 : vector<1x1xf32>
    %208 = vector.shape_cast %207 : vector<1x1xf32> to vector<1x1xf32>
    %209 = vector.broadcast %208 : vector<1x1xf32> to vector<8x1xf32>
    %210 = arith.select %205, %209, %196 : vector<8x1xi1>, vector<8x1xf32>
    %211 = vector.broadcast %202 : vector<1x1xf32> to vector<8x1xf32>
    %212 = arith.mulf %210, %211 : vector<8x1xf32>
    %213 = vector.broadcast %212 : vector<8x1xf32> to vector<8x16xf32>
    %214 = vector.broadcast %203 : vector<1x16xf32> to vector<8x16xf32>
    %215 = arith.mulf %213, %214 : vector<8x16xf32>
    %216 = arith.subf %195, %215 : vector<8x16xf32>
    %217 = vector.extract_strided_slice %216 {offsets = [0, 15], sizes = [8, 1], strides = [1, 1]} : vector<8x16xf32> to vector<8x1xf32>
    %218 = vector.extract_strided_slice %217 {offsets = [7, 0], sizes = [1, 1], strides = [1, 1]} : vector<8x1xf32> to vector<1x1xf32>
    %219 = tpu.reciprocal %218 {approx = true} : vector<1x1xf32> -> vector<1x1xf32>
    %220 = arith.mulf %218, %219 : vector<1x1xf32>
    %cst_33 = arith.constant 2.000000e+00 : f32
    %221 = vector.broadcast %cst_33 : f32 to vector<1x1xf32>
    %222 = arith.subf %221, %220 : vector<1x1xf32>
    %223 = arith.mulf %219, %222 : vector<1x1xf32>
    %224 = vector.extract_strided_slice %216 {offsets = [7, 0], sizes = [1, 16], strides = [1, 1]} : vector<8x16xf32> to vector<1x16xf32>
    %c7_i32 = arith.constant 7 : i32
    %225 = vector.broadcast %c7_i32 : i32 to vector<8x1xi32>
    %226 = arith.cmpi eq, %69, %225 : vector<8x1xi32>
    %cst_34 = arith.constant 1.000000e+00 : f32
    %227 = vector.broadcast %cst_34 : f32 to vector<1x1xf32>
    %228 = arith.subf %218, %227 : vector<1x1xf32>
    %229 = vector.shape_cast %228 : vector<1x1xf32> to vector<1x1xf32>
    %230 = vector.broadcast %229 : vector<1x1xf32> to vector<8x1xf32>
    %231 = arith.select %226, %230, %217 : vector<8x1xi1>, vector<8x1xf32>
    %232 = vector.broadcast %223 : vector<1x1xf32> to vector<8x1xf32>
    %233 = arith.mulf %231, %232 : vector<8x1xf32>
    %234 = vector.broadcast %233 : vector<8x1xf32> to vector<8x16xf32>
    %235 = vector.broadcast %224 : vector<1x16xf32> to vector<8x16xf32>
    %236 = arith.mulf %234, %235 : vector<8x16xf32>
    %237 = arith.subf %216, %236 : vector<8x16xf32>
    %238 = vector.extract_strided_slice %237 {offsets = [0, 0], sizes = [1, 8], strides = [1, 1]} : vector<8x16xf32> to vector<1x8xf32>
    %c0_35 = arith.constant 0 : index
    %c0_36 = arith.constant 0 : index
    %239 = vector.load %arg2[%c0_35, %c0_36] : memref<1x64xf32, #tpu.memory_space<vmem>>, vector<1x8xf32>
    tpu.vector_store %arg2[%c0_35, %c0_36], %238 {strides = array<i32>} : memref<1x64xf32, #tpu.memory_space<vmem>>, vector<1x8xf32>,
    %240 = vector.extract_strided_slice %237 {offsets = [1, 0], sizes = [1, 8], strides = [1, 1]} : vector<8x16xf32> to vector<1x8xf32>
    %c0_37 = arith.constant 0 : index
    %c8_38 = arith.constant 8 : index
    %241 = vector.load %arg2[%c0_37, %c8_38] : memref<1x64xf32, #tpu.memory_space<vmem>>, vector<1x8xf32>
    tpu.vector_store %arg2[%c0_37, %c8_38], %240 {strides = array<i32>} : memref<1x64xf32, #tpu.memory_space<vmem>>, vector<1x8xf32>,
    %242 = vector.extract_strided_slice %237 {offsets = [2, 0], sizes = [1, 8], strides = [1, 1]} : vector<8x16xf32> to vector<1x8xf32>
    %c0_39 = arith.constant 0 : index
    %c16 = arith.constant 16 : index
    %243 = vector.load %arg2[%c0_39, %c16] : memref<1x64xf32, #tpu.memory_space<vmem>>, vector<1x8xf32>
    tpu.vector_store %arg2[%c0_39, %c16], %242 {strides = array<i32>} : memref<1x64xf32, #tpu.memory_space<vmem>>, vector<1x8xf32>,
    %244 = vector.extract_strided_slice %237 {offsets = [3, 0], sizes = [1, 8], strides = [1, 1]} : vector<8x16xf32> to vector<1x8xf32>
    %c0_40 = arith.constant 0 : index
    %c24 = arith.constant 24 : index
    %245 = vector.load %arg2[%c0_40, %c24] : memref<1x64xf32, #tpu.memory_space<vmem>>, vector<1x8xf32>
    tpu.vector_store %arg2[%c0_40, %c24], %244 {strides = array<i32>} : memref<1x64xf32, #tpu.memory_space<vmem>>, vector<1x8xf32>,
    %246 = vector.extract_strided_slice %237 {offsets = [4, 0], sizes = [1, 8], strides = [1, 1]} : vector<8x16xf32> to vector<1x8xf32>
    %c0_41 = arith.constant 0 : index
    %c32 = arith.constant 32 : index
    %247 = vector.load %arg2[%c0_41, %c32] : memref<1x64xf32, #tpu.memory_space<vmem>>, vector<1x8xf32>
    tpu.vector_store %arg2[%c0_41, %c32], %246 {strides = array<i32>} : memref<1x64xf32, #tpu.memory_space<vmem>>, vector<1x8xf32>,
    %248 = vector.extract_strided_slice %237 {offsets = [5, 0], sizes = [1, 8], strides = [1, 1]} : vector<8x16xf32> to vector<1x8xf32>
    %c0_42 = arith.constant 0 : index
    %c40 = arith.constant 40 : index
    %249 = vector.load %arg2[%c0_42, %c40] : memref<1x64xf32, #tpu.memory_space<vmem>>, vector<1x8xf32>
    tpu.vector_store %arg2[%c0_42, %c40], %248 {strides = array<i32>} : memref<1x64xf32, #tpu.memory_space<vmem>>, vector<1x8xf32>,
    %250 = vector.extract_strided_slice %237 {offsets = [6, 0], sizes = [1, 8], strides = [1, 1]} : vector<8x16xf32> to vector<1x8xf32>
    %c0_43 = arith.constant 0 : index
    %c48 = arith.constant 48 : index
    %251 = vector.load %arg2[%c0_43, %c48] : memref<1x64xf32, #tpu.memory_space<vmem>>, vector<1x8xf32>
    tpu.vector_store %arg2[%c0_43, %c48], %250 {strides = array<i32>} : memref<1x64xf32, #tpu.memory_space<vmem>>, vector<1x8xf32>,
    %252 = vector.extract_strided_slice %237 {offsets = [7, 0], sizes = [1, 8], strides = [1, 1]} : vector<8x16xf32> to vector<1x8xf32>
    %c0_44 = arith.constant 0 : index
    %c56 = arith.constant 56 : index
    %253 = vector.load %arg2[%c0_44, %c56] : memref<1x64xf32, #tpu.memory_space<vmem>>, vector<1x8xf32>
    tpu.vector_store %arg2[%c0_44, %c56], %252 {strides = array<i32>} : memref<1x64xf32, #tpu.memory_space<vmem>>, vector<1x8xf32>,
    return
  }
}

</mosaic_0001>

<bundles_post_ra>
// kernel: model_forward.1
= control target key start
LH: loop header
LB: loop body
LE: loop exit
PB: predicated region body
PF: predicated region fallthrough
CT: control target
= control target key end

     0   :  { %7 = vsyncpa [#allocation5], 0  ;;  %s586_s0 = inlined_call_operand.vmem [shape: f32[1,6,6], index: 0, kind: input, shape index: {}]   ;;  %s587_s1 = inlined_call_operand.vmem [shape: f32[9], index: 1, kind: input, shape index: {}]   ;;  %s588_s2 = inlined_call_operand.hbm [shape: f32[1,64], index: 2, kind: output, shape index: {}]  }
   0x1   :  { %8 = vsyncpa [#allocation4], 0  ;;  %s17_s11 = sshll.u32 %s587_s1, 4  ;;  %s18_s11 = int_to_ptr.vmem [resolvable:$true] %s17_s11 }
   0x2   :  { %s472_s12 = scalar_lea.vmem %s18_s11, 16  ;;  %p477_p1 = scmp.lt.s32.totalorder %s18_s11, %s18_s11 }
   0x3   :  { %p473_p0 = scmp.ne.s32.totalorder %s18_s11, %s472_s12  ;;  %p478_p2 = scmp.lt.s32.totalorder %s472_s12, %s472_s12 }
   0x5   :  { %p479_p3 = por %p478_p2, %p477_p1 }
   0x7   :  { %p480_p4 = pnand %p479_p3, %p473_p0 }
   0x9   :  { %483 = shalt.err (!%p480_p4)
}
   0xa   :  { %s508_s13 = smov [#allocation3]  }
   0xb   :  { %20 = dma.vmem_to_smem %s18_s11, 16, %s508_s13, [#allocation5]  }
   0xc   :  { %504 = dma.done.wait [#allocation5], 16  }
   0xd   :  { %505 = vsyncadd [#allocation5], 4294967280 }
   0xe   :  { %24 = sfence }
   0xf   :  { %vm34_vm0 = vcmask 130048   ;;  %v36_v0 = vld [vmem:[%s586_s0] sm:$0x3f]  ;;  %vm37_vm1 = vcmask 46080   ;;  %v509_v1 = vmov 0.0   ;;  %s510_s1 = smov 16   ;;  %v126_v54 = vlaneseq }
  0x10   :  { %35 = vst.msk [vmem:[#allocation2] sm:$0xff] %vm34_vm0, %v509_v1  ;;  %vm40_vm2 = vcmask 1047680   ;;  %s413_s16 = sld [smem:[#allocation3 + $0x7]]  ;;  %s511_s19 = smov 1   ;;  %v515_v50 = vmov 8   ;;  %vm354_vm14 = vcmask 57344  }
  0x11   :  { %38 = vst.msk [vmem:[#allocation2] sm:$0x3f] %vm37_vm1, %v36_v0  ;;  %s410_s17 = sld [smem:[#allocation3 + $0x4]]  ;;  %s512_s20 = smov 2   ;;  %444 = vset.pattern.permute.xlu1 %v515_v50  ;;  %v561_v55 = vshrl.u32 %v126_v54, 7  ;;  %v129_v56 = vand.u32 127, %v126_v54 }
  0x12   :  { %s411_s18 = sld [smem:[#allocation3 + $0x5]]  ;;  %s513_s25 = smov 120   ;;  %vm360_vm15 = vcmask 123969   ;;  %vm365_vm0 = vcmask 190594   ;;  %vm370_vm1 = vcmask 257219  }
  0x13   :  { %s414_s0 = sld [smem:[#allocation3 + $0x8]]  ;;  %s514_s26 = smov 8   ;;  %vm130_vm4 = vcmp.eq.s32.totalorder %v561_v55, %v129_v56  ;;  %vm132_vm5 = vcmp.ge.s32.totalorder %v129_v56, 8  ;;  %v146_v63 = vsub.s32 0, %v561_v55  ;;  %vm142_vm6 = vcmp.eq.s32.totalorder %v561_v55, 0 }
  0x14   :  { %s409_s21 = sld [smem:[#allocation3 + $0x3]]  ;;  %v131_v57 = vsel %vm130_vm4, 1.0, %v509_v1  ;;  %vm169_vm7 = vcmp.eq.s32.totalorder %v561_v55, 1  ;;  %vm196_vm8 = vcmp.eq.s32.totalorder %v561_v55, 2  ;;  %vm223_vm9 = vcmp.eq.s32.totalorder %v561_v55, 3  ;;  %s523_s28 = smov 24  }
  0x15   :  { %s412_s22 = sld [smem:[#allocation3 + $0x6]]  ;;  %vm250_vm10 = vcmp.eq.s32.totalorder %v561_v55, 4  ;;  %vm277_vm11 = vcmp.eq.s32.totalorder %v561_v55, 5  ;;  %vm304_vm12 = vcmp.eq.s32.totalorder %v561_v55, 6  ;;  %vm331_vm13 = vcmp.eq.s32.totalorder %v561_v55, 7  ;;  %s524_s29 = smov 40  }
  0x16   :  { %v92_v5 = vstv %s413_s16  ;;  %s407_s23 = sld [smem:[#allocation3 + $0x1]]  ;;  %s525_s30 = smov 56   ;;  %vm385_vm4 = vcmask 457094  }
  0x17   :  { %v66_v6 = vstv %s410_s17  ;;  %s408_s24 = sld [smem:[#allocation3 + $0x2]]  ;;  %s526_s3 = smov 32  }
  0x18   :  { %v39_v2 = vld [vmem:[#allocation2] sm:$0xff]  ;;  %v73_v11 = vstv %s411_s18  ;;  %s25_s27 = sld [smem:[#allocation3]]  ;;  %s527_s4 = smov 48  }
  0x19   :  { %41 = vrot.lane.b32.xlu0 %v39_v2, %s510_s1  ;;  %v99_v13 = vstv %s414_s0  ;;  %s528_s5 = smov [#allocation6]  }
  0x1a   :  { %v64_v15 = vstv %s409_s21  ;;  %s398_s6 = sshll.u32 %s528_s5, 4  ;;  %s399_s6 = int_to_ptr.vmem [resolvable:$true] %s398_s6 }
  0x1b   :  { %v90_v18 = vstv %s412_s22  ;;  %s484_s7 = scalar_lea.vmem %s399_s6, 16  ;;  %s488_s8 = scalar_lea.vmem %s399_s6, 32 }
  0x1c   :  { %v49_v24 = vstv %s407_s23  ;;  %p485_p5 = scmp.ne.s32.totalorder %s399_s6, %s484_s7  ;;  %p489_p6 = scmp.lt.s32.totalorder %s399_s6, %s399_s6 }
  0x1d   :  { %v56_v29 = vstv %s408_s24  ;;  %p490_p7 = scmp.lt.s32.totalorder %s488_s8, %s484_s7 }
  0x1e   :  { %v47_v35 = vstv %s25_s27 }
  0x1f   :  { %p491_p8 = por %p490_p7, %p489_p6 }
  0x21   :  { %p492_p9 = pnand %p491_p8, %p485_p5 }
  0x8b   :  { %v42_v3 = vpop.permute.xlu0 %41 }
  0x8c   :  { %v43_v4 = vsel %vm40_vm2, %v42_v3, %v39_v2 }
  0x8d   :  { %44 = vrot.lane.b32.xlu0 %v43_v4, %s510_s1 }
  0xff   :  { %v45_v7 = vpop.permute.xlu0 %44 }
 0x100   :  { %v46_v8 = vsel %vm40_vm2, %v45_v7, %v39_v2  ;;  %v516_v7 = vmov 9   ;;  %vm375_vm2 = vcmask 323844  }
 0x101   :  { %v93_v9 = vmul.f32 %v92_v5, %v46_v8  ;;  %v67_v10 = vmul.f32 %v66_v6, %v46_v8  ;;  %v74_v12 = vmul.f32 %v73_v11, %v46_v8  ;;  %v100_v14 = vmul.f32 %v99_v13, %v46_v8  ;;  %445 = vset.pattern.permute.xlu0 %v516_v7 }
 0x102   :  { %v65_v17 = vmul.f32 %v64_v15, %v46_v8  ;;  %v91_v22 = vmul.f32 %v90_v18, %v46_v8  ;;  %v50_v28 = vmul.f32 %v49_v24, %v46_v8  ;;  %v57_v30 = vmul.f32 %v56_v29, %v46_v8 }
 0x103   :  { %95 = vrot.lane.b32.xlu0 %v93_v9, %s511_s19  ;;  %69 = vrot.lane.b32.xlu1 %v67_v10, %s511_s19  ;;  %v48_v37 = vmul.f32 %v47_v35, %v46_v8  ;;  %v200_v29 = vsub.s32 2, %v561_v55 }
 0x107   :  { %76 = vrot.lane.b32.xlu1 %v74_v12, %s512_s20 }
 0x10b   :  { %102 = vrot.lane.b32.xlu1 %v100_v14, %s512_s20  ;;  %v173_v14 = vsub.s32 1, %v561_v55 }
 0x175   :  { %v70_v16 = vpop.permute.xlu1 %69  ;;  %v96_v20 = vpop.permute.xlu0 %95 }
 0x176   :  { %v72_v19 = vadd.f32 %v70_v16, %v65_v17  ;;  %v98_v25 = vadd.f32 %v96_v20, %v91_v22 }
 0x179   :  { %v77_v21 = vpop.permute.xlu1 %76 }
 0x17a   :  { %v79_v23 = vadd.f32 %v77_v21, %v72_v19  ;;  %v517_v21 = vmov 10  }
 0x17c   :  { %81 = vrot.lane.b32.xlu0 %v79_v23, %s513_s25 }
 0x17d   :  { %v103_v26 = vpop.permute.xlu1 %102 }
 0x17e   :  { %v105_v27 = vadd.f32 %v103_v26, %v98_v25 }
 0x180   :  { %107 = vrot.lane.b32.xlu1 %v105_v27, %s513_s25  ;;  %52 = vrot.lane.b32.xlu0 %v50_v28, %s511_s19 }
 0x184   :  { %59 = vrot.lane.b32.xlu1 %v57_v30, %s512_s20 }
 0x1ee   :  { %v82_v31 = vpop.permute.xlu0 %81 }
 0x1ef   :  { %v84_v32 = vrot.slane %v82_v31, 7 }
 0x1f1   :  { %86 = vrot.lane.b32.xlu0 %v84_v32, %s514_s26 }
 0x1f2   :  { %v108_v33 = vpop.permute.xlu1 %107  ;;  %v53_v36 = vpop.permute.xlu0 %52 }
 0x1f3   :  { %v110_v34 = vrot.slane %v108_v33, 6  ;;  %v55_v39 = vadd.f32 %v53_v36, %v48_v37  ;;  %v518_v36 = vmov 11  }
 0x1f5   :  { %112 = vrot.lane.b32.xlu1 %v110_v34, %s514_s26 }
 0x1f6   :  { %v60_v38 = vpop.permute.xlu1 %59 }
 0x1f7   :  { %v62_v41 = vadd.f32 %v60_v38, %v55_v39 }
 0x263   :  { %v87_v40 = vpop.permute.xlu0 %86 }
 0x264   :  { %v89_v42 = vadd.f32 %v87_v40, %v62_v41 }
 0x267   :  { %v113_v43 = vpop.permute.xlu1 %112 }
 0x268   :  { %v115_v44 = vadd.f32 %v113_v43, %v89_v42 }
 0x26a   :  { %v116_v45 = vand.u32 2147483647, %v115_v44  ;;  %vm123_vm3 = vcmp.ge.f32.partialorder %v115_v44, 0.0  ;;  %v227_v44 = vsub.s32 3, %v561_v55 }
 0x26c   :  { %v117_v46 = vsub.f32 0.0, %v116_v45 }
 0x26e   :  { %v118_v47 = vmul.f32 1.442695, %v117_v46 }
 0x270   :  { %452 = vpow2.f32 %v118_v47 }
 0x27d   :  { %v453_v48 = vpop.eup %452 }
 0x27e   :  { %v120_v49 = vadd.f32 1.0, %v453_v48 }
 0x280   :  { %454 = vrcp.f32 %v120_v49 }
 0x28d   :  { %v455_v51 = vpop.eup %454 }
 0x28e   :  { %v124_v52 = vmul.f32 %v455_v51, %v453_v48 }
 0x290   :  { %v125_v53 = vsel %vm123_vm3, %v455_v51, %v124_v52  ;;  %v519_v51 = vmov 12   ;;  %vm380_vm3 = vcmask 390469  }
 0x291   :  { %134 = vrot.lane.b32.xlu0 %v125_v53, %s513_s25 }
 0x303   :  { %v135_v58 = vpop.permute.xlu0 %134 }
 0x304   :  { %v137_v59 = vsel %vm132_vm5, %v135_v58, %v131_v57  ;;  %vm390_vm5 = vcmask 523719  }
 0x305   :  { %456 = vrcp.f32 %v137_v59  ;;  %v415_v61 = vadd.f32 -1.0, %v137_v59  ;;  %v162_v1 = vrot.slane %v137_v59, %v146_v63 }
 0x307   :  { %v147_v2 = vrot.slane %v415_v61, %v146_v63 }
 0x309   :  { %v148_v5 = vsel %vm142_vm6, %v147_v2, %v137_v59 }
 0x312   :  { %v457_v60 = vpop.eup %456 }
 0x313   :  { %v139_v62 = vmul.f32 %v457_v60, %v137_v59 }
 0x315   :  { %v140_v0 = vsub.f32 2.0, %v139_v62 }
 0x317   :  { %v141_v3 = vmul.f32 %v457_v60, %v140_v0  ;;  %v254_v60 = vsub.s32 4, %v561_v55 }
 0x319   :  { %v152_v4 = vrot.slane %v141_v3, %v146_v63 }
 0x31b   :  { %v153_v6 = vmul.f32 %v152_v4, %v148_v5  ;;  %v520_v4 = vmov 13  }
 0x31d   :  { %156 = vperm.xlu1 %444, %v153_v6  }
 0x321   :  { %446 = vset.pattern.permute.xlu1 %v517_v21 }
 0x398   :  { %v157_v8 = vpop.permute.xlu1 %156 }
 0x399   :  { %v163_v9 = vmul.f32 %v162_v1, %v157_v8 }
 0x39b   :  { %v164_v10 = vsub.f32 %v137_v59, %v163_v9 }
 0x39d   :  { %458 = vrcp.f32 %v164_v10  ;;  %v416_v12 = vadd.f32 -1.0, %v164_v10  ;;  %v189_v22 = vrot.slane %v164_v10, %v173_v14 }
 0x39f   :  { %v174_v16 = vrot.slane %v416_v12, %v173_v14 }
 0x3a1   :  { %v175_v19 = vsel %vm169_vm7, %v174_v16, %v164_v10 }
 0x3aa   :  { %v459_v11 = vpop.eup %458 }
 0x3ab   :  { %v166_v13 = vmul.f32 %v459_v11, %v164_v10 }
 0x3ad   :  { %v167_v15 = vsub.f32 2.0, %v166_v13 }
 0x3af   :  { %v168_v17 = vmul.f32 %v459_v11, %v167_v15  ;;  %v281_v11 = vsub.s32 5, %v561_v55 }
 0x3b1   :  { %v179_v18 = vrot.slane %v168_v17, %v173_v14 }
 0x3b3   :  { %v180_v20 = vmul.f32 %v179_v18, %v175_v19  ;;  %v521_v18 = vmov 14  }
 0x3b5   :  { %183 = vperm.xlu0 %445, %v180_v20  }
 0x3b9   :  { %448 = vset.pattern.permute.xlu0 %v519_v51 }
 0x430   :  { %v184_v23 = vpop.permute.xlu0 %183 }
 0x431   :  { %v190_v24 = vmul.f32 %v189_v22, %v184_v23 }
 0x433   :  { %v191_v25 = vsub.f32 %v164_v10, %v190_v24 }
 0x435   :  { %460 = vrcp.f32 %v191_v25  ;;  %v417_v27 = vadd.f32 -1.0, %v191_v25  ;;  %v216_v37 = vrot.slane %v191_v25, %v200_v29 }
 0x437   :  { %v201_v31 = vrot.slane %v417_v27, %v200_v29 }
 0x439   :  { %v202_v34 = vsel %vm196_vm8, %v201_v31, %v191_v25 }
 0x442   :  { %v461_v26 = vpop.eup %460 }
 0x443   :  { %v193_v28 = vmul.f32 %v461_v26, %v191_v25 }
 0x445   :  { %v194_v30 = vsub.f32 2.0, %v193_v28 }
 0x447   :  { %v195_v32 = vmul.f32 %v461_v26, %v194_v30  ;;  %v308_v26 = vsub.s32 6, %v561_v55 }
 0x449   :  { %v206_v33 = vrot.slane %v195_v32, %v200_v29 }
 0x44b   :  { %v207_v35 = vmul.f32 %v206_v33, %v202_v34  ;;  %v522_v33 = vmov 15  }
 0x44d   :  { %210 = vperm.xlu1 %446, %v207_v35  }
 0x451   :  { %447 = vset.pattern.permute.xlu1 %v518_v36 }
 0x4c8   :  { %v211_v38 = vpop.permute.xlu1 %210 }
 0x4c9   :  { %v217_v39 = vmul.f32 %v216_v37, %v211_v38 }
 0x4cb   :  { %v218_v40 = vsub.f32 %v191_v25, %v217_v39 }
 0x4cd   :  { %462 = vrcp.f32 %v218_v40  ;;  %v418_v42 = vadd.f32 -1.0, %v218_v40  ;;  %v243_v52 = vrot.slane %v218_v40, %v227_v44 }
 0x4cf   :  { %v228_v46 = vrot.slane %v418_v42, %v227_v44 }
 0x4d1   :  { %v229_v49 = vsel %vm223_vm9, %v228_v46, %v218_v40 }
 0x4da   :  { %v463_v41 = vpop.eup %462 }
 0x4db   :  { %v220_v43 = vmul.f32 %v463_v41, %v218_v40 }
 0x4dd   :  { %v221_v45 = vsub.f32 2.0, %v220_v43 }
 0x4df   :  { %v222_v47 = vmul.f32 %v463_v41, %v221_v45  ;;  %v335_v41 = vsub.s32 7, %v561_v55 }
 0x4e1   :  { %v233_v48 = vrot.slane %v222_v47, %v227_v44 }
 0x4e3   :  { %v234_v50 = vmul.f32 %v233_v48, %v229_v49 }
 0x4e5   :  { %237 = vperm.xlu1 %447, %v234_v50  }
 0x4e9   :  { %449 = vset.pattern.permute.xlu1 %v520_v4 }
 0x560   :  { %v238_v53 = vpop.permute.xlu1 %237 }
 0x561   :  { %v244_v54 = vmul.f32 %v243_v52, %v238_v53 }
 0x563   :  { %v245_v56 = vsub.f32 %v218_v40, %v244_v54 }
 0x565   :  { %464 = vrcp.f32 %v245_v56  ;;  %v419_v58 = vadd.f32 -1.0, %v245_v56  ;;  %v270_v5 = vrot.slane %v245_v56, %v254_v60 }
 0x567   :  { %v255_v62 = vrot.slane %v419_v58, %v254_v60 }
 0x569   :  { %v256_v2 = vsel %vm250_vm10, %v255_v62, %v245_v56 }
 0x572   :  { %v465_v57 = vpop.eup %464 }
 0x573   :  { %v247_v59 = vmul.f32 %v465_v57, %v245_v56 }
 0x575   :  { %v248_v61 = vsub.f32 2.0, %v247_v59 }
 0x577   :  { %v249_v63 = vmul.f32 %v465_v57, %v248_v61 }
 0x579   :  { %v260_v0 = vrot.slane %v249_v63, %v254_v60 }
 0x57b   :  { %v261_v3 = vmul.f32 %v260_v0, %v256_v2 }
 0x57d   :  { %264 = vperm.xlu0 %448, %v261_v3  }
 0x581   :  { %451 = vset.pattern.permute.xlu0 %v522_v33 }
 0x5f8   :  { %v265_v6 = vpop.permute.xlu0 %264 }
 0x5f9   :  { %v271_v7 = vmul.f32 %v270_v5, %v265_v6 }
 0x5fb   :  { %v272_v1 = vsub.f32 %v245_v56, %v271_v7 }
 0x5fd   :  { %466 = vrcp.f32 %v272_v1  ;;  %v420_v9 = vadd.f32 -1.0, %v272_v1  ;;  %v297_v19 = vrot.slane %v272_v1, %v281_v11 }
 0x5ff   :  { %v282_v13 = vrot.slane %v420_v9, %v281_v11 }
 0x601   :  { %v283_v16 = vsel %vm277_vm11, %v282_v13, %v272_v1 }
 0x60a   :  { %v467_v8 = vpop.eup %466 }
 0x60b   :  { %v274_v10 = vmul.f32 %v467_v8, %v272_v1 }
 0x60d   :  { %v275_v12 = vsub.f32 2.0, %v274_v10 }
 0x60f   :  { %v276_v14 = vmul.f32 %v467_v8, %v275_v12 }
 0x611   :  { %v287_v15 = vrot.slane %v276_v14, %v281_v11 }
 0x613   :  { %v288_v17 = vmul.f32 %v287_v15, %v283_v16 }
 0x615   :  { %291 = vperm.xlu1 %449, %v288_v17  }
 0x619   :  { %450 = vset.pattern.permute.xlu1 %v521_v18 }
 0x690   :  { %v292_v20 = vpop.permute.xlu1 %291 }
 0x691   :  { %v298_v21 = vmul.f32 %v297_v19, %v292_v20 }
 0x693   :  { %v299_v22 = vsub.f32 %v272_v1, %v298_v21 }
 0x695   :  { %468 = vrcp.f32 %v299_v22  ;;  %v421_v24 = vadd.f32 -1.0, %v299_v22  ;;  %v324_v34 = vrot.slane %v299_v22, %v308_v26 }
 0x697   :  { %v309_v28 = vrot.slane %v421_v24, %v308_v26 }
 0x699   :  { %v310_v31 = vsel %vm304_vm12, %v309_v28, %v299_v22 }
 0x6a2   :  { %v469_v23 = vpop.eup %468 }
 0x6a3   :  { %v301_v25 = vmul.f32 %v469_v23, %v299_v22 }
 0x6a5   :  { %v302_v27 = vsub.f32 2.0, %v301_v25 }
 0x6a7   :  { %v303_v29 = vmul.f32 %v469_v23, %v302_v27 }
 0x6a9   :  { %v314_v30 = vrot.slane %v303_v29, %v308_v26 }
 0x6ab   :  { %v315_v32 = vmul.f32 %v314_v30, %v310_v31 }
 0x6ad   :  { %318 = vperm.xlu1 %450, %v315_v32  }
 0x728   :  { %v319_v35 = vpop.permute.xlu1 %318 }
 0x729   :  { %v325_v36 = vmul.f32 %v324_v34, %v319_v35 }
 0x72b   :  { %v326_v37 = vsub.f32 %v299_v22, %v325_v36 }
 0x72d   :  { %470 = vrcp.f32 %v326_v37  ;;  %v422_v39 = vadd.f32 -1.0, %v326_v37  ;;  %v351_v48 = vrot.slane %v326_v37, %v335_v41 }
 0x72f   :  { %v336_v43 = vrot.slane %v422_v39, %v335_v41 }
 0x731   :  { %v337_v46 = vsel %vm331_vm13, %v336_v43, %v326_v37 }
 0x73a   :  { %v471_v38 = vpop.eup %470 }
 0x73b   :  { %v328_v40 = vmul.f32 %v471_v38, %v326_v37 }
 0x73d   :  { %v329_v42 = vsub.f32 2.0, %v328_v40 }
 0x73f   :  { %v330_v44 = vmul.f32 %v471_v38, %v329_v42 }
 0x741   :  { %v341_v45 = vrot.slane %v330_v44, %v335_v41 }
 0x743   :  { %v342_v47 = vmul.f32 %v341_v45, %v337_v46 }
 0x745   :  { %345 = vperm.xlu0 %451, %v342_v47  }
 0x7c0   :  { %v346_v49 = vpop.permute.xlu0 %345 }
 0x7c1   :  { %v352_v50 = vmul.f32 %v351_v48, %v346_v49 }
 0x7c3   :  { %v353_v51 = vsub.f32 %v326_v37, %v352_v50 }
 0x7c5   :  { %367 = vrot.lane.b32.xlu0 %v353_v51, %s523_s28  ;;  %357 = vrot.lane.b32.xlu1 %v353_v51, %s514_s26  ;;  %355 = vst.msk [vmem:[#allocation6] sm:$0x1] %vm354_vm14, %v353_v51 }
 0x7c9   :  { %377 = vrot.lane.b32.xlu0 %v353_v51, %s524_s29  ;;  %362 = vrot.lane.b32.xlu1 %v353_v51, %s510_s1 }
 0x7cd   :  { %387 = vrot.lane.b32.xlu0 %v353_v51, %s525_s30  ;;  %372 = vrot.lane.b32.xlu1 %v353_v51, %s526_s3 }
 0x7d1   :  { %382 = vrot.lane.b32.xlu1 %v353_v51, %s527_s4 }
 0x837   :  { %v358_v55 = vpop.permute.xlu1 %357  ;;  %v368_v52 = vpop.permute.xlu0 %367 }
 0x838   :  { %361 = vst.msk [vmem:[#allocation6 - $0x1] sm:$0x2] %vm360_vm15, %v358_v55 }
 0x83b   :  { %v363_v53 = vpop.permute.xlu1 %362  ;;  %v378_v54 = vpop.permute.xlu0 %377 }
 0x83c   :  { %366 = vst.msk [vmem:[#allocation6 - $0x2] sm:$0x4] %vm365_vm0, %v363_v53 }
 0x83d   :  { %371 = vst.msk [vmem:[#allocation6 - $0x3] sm:$0x8] %vm370_vm1, %v368_v52 }
 0x83f   :  { %v373_v56 = vpop.permute.xlu1 %372  ;;  %v388_v58 = vpop.permute.xlu0 %387 }
 0x840   :  { %376 = vst.msk [vmem:[#allocation6 - $0x4] sm:$0x10] %vm375_vm2, %v373_v56 }
 0x841   :  { %381 = vst.msk [vmem:[#allocation6 - $0x5] sm:$0x20] %vm380_vm3, %v378_v54 }
 0x843   :  { %v383_v57 = vpop.permute.xlu1 %382 }
 0x844   :  { %386 = vst.msk [vmem:[#allocation6 - $0x6] sm:$0x40] %vm385_vm4, %v383_v57 }
 0x845   :  { %391 = vst.msk [vmem:[#allocation6 - $0x7] sm:$0x80] %vm390_vm5, %v388_v58 }
 0x846   :  { %495 = shalt.err (!%p492_p9)
}
 0x847   :  { %401 = dma.vmem_to_hbm [thread:$0]  %s399_s6, 16, %s588_s2, [#allocation4]  }
 0x848   :  { %506 = dma.done.wait [#allocation4], 16  }
 0x849   :  { %507 = vsyncadd [#allocation4], 4294967280 }
 0x84a   :  { %405 = vsyncpa [#allocation4], 1 }
 0x84b   :  { %406 = vsyncpa [#allocation5], 1 }

</bundles_post_ra>
